<compile_context>
chip_gen: v5e
topology: v5e:2x2
jax: 0.10.0
libtpu: 0.0.40
codegen_flags: <defaults>
</compile_context>

<pallas_src>
import functools

import jax
import jax.numpy as jnp
from jax.experimental import pallas as pl
from jax.experimental.pallas import tpu as pltpu


LANE = 128
ACC_ROWS_MAX = 64          # (64, 128) f32 accumulator = 8 vregs


def _tpu_kind():
    try:
        return jax.devices()[0].device_kind.lower()
    except Exception:
        return ""


def _choose_config():
    """Pick (num_splits, max_row_tile) per TPU generation."""
    kind = _tpu_kind()
    is_v7 = "7" in kind                       # v7x: 2 TensorCores / chip
    is_v5 = "v5" in kind                      # v5e: 16 MiB default scoped VMEM
    if is_v5 or not kind:
        max_tile = 4096                       # 2 inputs x 2 bufs x 2 MiB = 8 MiB
    else:
        max_tile = 8192                       # 2 inputs x 2 bufs x 4 MiB = 16 MiB
    num_splits = 2 if is_v7 else 1
    return num_splits, max_tile


def _kl_kernel(mean_ref, logvar_ref, out_ref, acc_ref, *,
               rows, row_tile, blocks_per_core, acc_rows,
               need_mask, has_core_axis):
    if has_core_axis:
        core = pl.program_id(0)
        step = pl.program_id(1)
        num_steps = pl.num_programs(1)
    else:
        core = 0
        step = pl.program_id(0)
        num_steps = pl.num_programs(0)

    # Zero this core's accumulator on its first reduction step.
    @pl.when(step == 0)
    def _():
        acc_ref[...] = jnp.zeros_like(acc_ref)

    m = mean_ref[...].astype(jnp.float32)
    lv = logvar_ref[...].astype(jnp.float32)
    term = 1.0 + lv - m * m - jnp.exp(lv)          # elementwise (VPU + EUP)

    def _accumulate(t):
        # Tree of independent VPU adds into a small fixed accumulator:
        # only `acc_rows/8` VMEM loads + stores per step instead of
        # row_tile/8 of each.
        acc_ref[...] += jnp.sum(t.reshape(-1, acc_rows, LANE), axis=0)

    if need_mask:
        # Only the last real block and (at most one) clamped overflow block
        # are ragged; gate the mask behind a runtime predicate so the
        # steady-state path stays a plain accumulate.
        block_idx = core * blocks_per_core + step
        row_start = block_idx * row_tile
        is_ragged = row_start + row_tile > rows

        @pl.when(is_ragged)
        def _():
            row_ids = (jax.lax.broadcasted_iota(jnp.int32, (row_tile, LANE), 0)
                       + row_start)
            _accumulate(jnp.where(row_ids < rows, term, 0.0))

        @pl.when(jnp.logical_not(is_ragged))
        def _():
            _accumulate(term)
    else:
        _accumulate(term)

    # Finalize: single small cross-lane reduce + (-0.5) scale, once per core.
    @pl.when(step == num_steps - 1)
    def _():
        val = -0.5 * jnp.sum(acc_ref[...])
        sub_ids = jax.lax.broadcasted_iota(jnp.int32, (1, 8, LANE), 1)
        lane_ids = jax.lax.broadcasted_iota(jnp.int32, (1, 8, LANE), 2)
        out_ref[...] = jnp.where((sub_ids == 0) & (lane_ids == 0), val, 0.0)


@functools.partial(jax.jit, static_argnames=("num_splits", "max_tile"))
def _kl_reduce(mean, log_var, *, num_splits, max_tile):
    m_flat = jnp.ravel(mean)           # no wrapper astype — cast is in-kernel
    lv_flat = jnp.ravel(log_var)
    n = m_flat.shape[0]

    # Pad only to the next multiple of 128 (rare; static branch).  Zero pad
    # contributes exactly 1 + 0 - 0 - exp(0) = 0 to the sum.
    n_pad = ((n + LANE - 1) // LANE) * LANE
    if n_pad != n:
        m_flat = jnp.pad(m_flat, (0, n_pad - n))
        lv_flat = jnp.pad(lv_flat, (0, n_pad - n))

    rows = n_pad // LANE
    m2d = m_flat.reshape(rows, LANE)
    lv2d = lv_flat.reshape(rows, LANE)

    # The core split only pays off when each core gets at least one full tile.
    if num_splits > 1 and rows < num_splits * max_tile:
        num_splits = 1

    if rows <= max_tile:
        row_tile = rows            # single full-extent block — always legal
    else:
        row_tile = max_tile        # multiple of 64 (and of any sublane packing)

    num_blocks = (rows + row_tile - 1) // row_tile
    blocks_per_core = (num_blocks + num_splits - 1) // num_splits
    need_mask = num_splits * blocks_per_core * row_tile > rows
    last_block = num_blocks - 1

    # Accumulator rows must divide row_tile; keep >= 8 when possible.
    if row_tile % ACC_ROWS_MAX == 0:
        acc_rows = ACC_ROWS_MAX
    elif row_tile % 8 == 0:
        acc_rows = 8
    else:
        acc_rows = row_tile        # tiny single-block case

    has_core_axis = num_splits > 1

    if has_core_axis:
        grid = (num_splits, blocks_per_core)

        def in_map(c, i):
            # Clamp so overflow steps of the core split never issue a fully
            # out-of-bounds DMA (their contribution is zeroed by the mask).
            return (jnp.minimum(c * blocks_per_core + i, last_block), 0)

        out_map = lambda c, i: (c, 0, 0)
        dim_sem = (pltpu.CORE_PARALLEL, pltpu.ARBITRARY)
    else:
        grid = (num_blocks,)
        in_map = lambda i: (i, 0)
        out_map = lambda i: (0, 0, 0)
        dim_sem = ("arbitrary",)

    kernel = functools.partial(
        _kl_kernel,
        rows=rows,
        row_tile=row_tile,
        blocks_per_core=blocks_per_core,
        acc_rows=acc_rows,
        need_mask=need_mask,
        has_core_axis=has_core_axis,
    )

    partials = pl.pallas_call(
        kernel,
        out_shape=jax.ShapeDtypeStruct((num_splits, 8, LANE), jnp.float32),
        grid_spec=pltpu.PrefetchScalarGridSpec(
            num_scalar_prefetch=0,
            grid=grid,
            in_specs=[
                pl.BlockSpec((row_tile, LANE), in_map),
                pl.BlockSpec((row_tile, LANE), in_map),
            ],
            out_specs=pl.BlockSpec((1, 8, LANE), out_map),
            scratch_shapes=[pltpu.VMEM((acc_rows, LANE), jnp.float32)],
        ),
        compiler_params=pltpu.CompilerParams(dimension_semantics=dim_sem),
    )(m2d, lv2d)

    # Each core's block holds its (-0.5-scaled) partial at [c, 0, 0], zeros
    # elsewhere; summing everything adds the per-core partials.
    return jnp.sum(partials)


def kl_divergence_loss(mean, log_var):
    """Scalar f32: -0.5 * sum(1 + log_var - mean^2 - exp(log_var))."""
    assert mean.shape == log_var.shape, "mean / log_var must match shapes"
    num_splits, max_tile = _choose_config()
    if num_splits > 1:
        try:
            return _kl_reduce(mean, log_var,
                              num_splits=num_splits, max_tile=max_tile)
        except Exception:
            pass  # fall back to the single-core path below
    return _kl_reduce(mean, log_var, num_splits=1, max_tile=max_tile)


if __name__ == "__main__":
    key = jax.random.PRNGKey(0)
    k1, k2 = jax.random.split(key)

    # Small VAE-style latent (NCHW-like): [2, 4, 16, 16]
    mean = jax.random.normal(k1, (2, 4, 16, 16), dtype=jnp.float32)
    log_var = jax.random.normal(k2, (2, 4, 16, 16), dtype=jnp.float32) * 0.1

    loss = kl_divergence_loss(mean, log_var)
    loss = jax.block_until_ready(loss)

    # Pure-JAX reference check.
    ref = -0.5 * jnp.sum(1.0 + log_var - mean**2 - jnp.exp(log_var))
    assert jnp.allclose(loss, ref, rtol=1e-5, atol=1e-5), (loss, ref)

    print("KERNEL_OK")
</pallas_src>

<mosaic_0001>
module attributes {stable_mosaic.version = 11 : i64} {
  func.func @_kl_kernel(%arg0: i32, %arg1: memref<16x128xf32, #tpu.memory_space<vmem>>, %arg2: memref<16x128xf32, #tpu.memory_space<vmem>>, %arg3: memref<1x8x128xf32, #tpu.memory_space<vmem>>, %arg4: memref<8x128xf32, #tpu.memory_space<vmem>>) attributes {dimension_semantics = [#tpu.dimension_semantics<arbitrary>], iteration_bounds = array<i64: 1>, scalar_prefetch = 0 : i64, scratch_operands = 1 : i64, tpu.core_type = #tpu.core_type<tc>, window_params = [{transform_indices = @transform_0, window_bounds = array<i64: 16, 128>}, {transform_indices = @transform_1, window_bounds = array<i64: 16, 128>}, {pipeline_mode = #tpu.pipeline_mode<synchronous>, transform_indices = @transform_2, window_bounds = array<i64: 1, 8, 128>}]} {
    %c0_i32 = arith.constant 0 : i32
    %0 = arith.cmpi eq, %arg0, %c0_i32 : i32
    %1 = arith.extui %0 : i1 to i32
    %c0_i32_0 = arith.constant 0 : i32
    %2 = arith.cmpi ne, %1, %c0_i32_0 : i32
    scf.if %2 {
      %cst_11 = arith.constant 0.000000e+00 : f32
      %19 = vector.broadcast %cst_11 : f32 to vector<8x128xf32>
      %c0_12 = arith.constant 0 : index
      %c0_13 = arith.constant 0 : index
      %20 = vector.load %arg4[%c0_12, %c0_13] : memref<8x128xf32, #tpu.memory_space<vmem>>, vector<8x128xf32>
      tpu.vector_store %arg4[%c0_12, %c0_13], %19 {strides = array<i32>} : memref<8x128xf32, #tpu.memory_space<vmem>>, vector<8x128xf32>,
    } else {
    }
    %c0 = arith.constant 0 : index
    %c0_1 = arith.constant 0 : index
    %3 = vector.load %arg1[%c0, %c0_1] : memref<16x128xf32, #tpu.memory_space<vmem>>, vector<16x128xf32>
    %c0_2 = arith.constant 0 : index
    %c0_3 = arith.constant 0 : index
    %4 = vector.load %arg2[%c0_2, %c0_3] : memref<16x128xf32, #tpu.memory_space<vmem>>, vector<16x128xf32>
    %cst = arith.constant 1.000000e+00 : f32
    %5 = vector.broadcast %cst : f32 to vector<16x128xf32>
    %6 = arith.addf %5, %4 : vector<16x128xf32>
    %7 = arith.mulf %3, %3 : vector<16x128xf32>
    %8 = arith.subf %6, %7 : vector<16x128xf32>
    %9 = math.exp %4 : vector<16x128xf32>
    %10 = arith.subf %8, %9 : vector<16x128xf32>
    %c0_4 = arith.constant 0 : index
    %c0_5 = arith.constant 0 : index
    %11 = vector.load %arg4[%c0_4, %c0_5] : memref<8x128xf32, #tpu.memory_space<vmem>>, vector<8x128xf32>
    %12 = vector.shape_cast %10 : vector<16x128xf32> to vector<2x8x128xf32>
    %cst_6 = arith.constant dense<0.000000e+00> : vector<8x128xf32>
    %13 = vector.multi_reduction <add>, %12, %cst_6 [0] : vector<2x8x128xf32> to vector<8x128xf32>
    %14 = arith.addf %11, %13 : vector<8x128xf32>
    %c0_7 = arith.constant 0 : index
    %c0_8 = arith.constant 0 : index
    %15 = vector.load %arg4[%c0_7, %c0_8] : memref<8x128xf32, #tpu.memory_space<vmem>>, vector<8x128xf32>
    tpu.vector_store %arg4[%c0_7, %c0_8], %14 {strides = array<i32>} : memref<8x128xf32, #tpu.memory_space<vmem>>, vector<8x128xf32>,
    %c0_i32_9 = arith.constant 0 : i32
    %16 = arith.cmpi eq, %arg0, %c0_i32_9 : i32
    %17 = arith.extui %16 : i1 to i32
    %c0_i32_10 = arith.constant 0 : i32
    %18 = arith.cmpi ne, %17, %c0_i32_10 : i32
    scf.if %18 {
      %c0_11 = arith.constant 0 : index
      %c0_12 = arith.constant 0 : index
      %19 = vector.load %arg4[%c0_11, %c0_12] : memref<8x128xf32, #tpu.memory_space<vmem>>, vector<8x128xf32>
      %20 = vector.shape_cast %19 : vector<8x128xf32> to vector<1x8x128xf32>
      %cst_13 = arith.constant dense<0.000000e+00> : vector<1xf32>
      %21 = vector.multi_reduction <add>, %20, %cst_13 [1, 2] : vector<1x8x128xf32> to vector<1xf32>
      %22 = vector.shape_cast %21 : vector<1xf32> to vector<1x1x1xf32>
      %23 = vector.extract %22[0, 0, 0] : f32 from vector<1x1x1xf32>
      %cst_14 = arith.constant -5.000000e-01 : f32
      %24 = arith.mulf %cst_14, %23 : f32
      %25 = tpu.iota {dimensions = array<i32: 1>} : vector<1x8x128xi32>
      %26 = tpu.iota {dimensions = array<i32: 2>} : vector<1x8x128xi32>
      %c0_i32_15 = arith.constant 0 : i32
      %27 = vector.broadcast %c0_i32_15 : i32 to vector<1x8x128xi32>
      %28 = arith.cmpi eq, %25, %27 : vector<1x8x128xi32>
      %c0_i32_16 = arith.constant 0 : i32
      %29 = vector.broadcast %c0_i32_16 : i32 to vector<1x8x128xi32>
      %30 = arith.cmpi eq, %26, %29 : vector<1x8x128xi32>
      %31 = arith.andi %28, %30 : vector<1x8x128xi1>
      %cst_17 = arith.constant 0.000000e+00 : f32
      %32 = vector.broadcast %24 : f32 to vector<1x8x128xf32>
      %33 = vector.broadcast %cst_17 : f32 to vector<1x8x128xf32>
      %34 = arith.select %31, %32, %33 : vector<1x8x128xi1>, vector<1x8x128xf32>
      %c0_18 = arith.constant 0 : index
      %c0_19 = arith.constant 0 : index
      %c0_20 = arith.constant 0 : index
      %35 = vector.load %arg3[%c0_18, %c0_19, %c0_20] : memref<1x8x128xf32, #tpu.memory_space<vmem>>, vector<1x8x128xf32>
      tpu.vector_store %arg3[%c0_18, %c0_19, %c0_20], %34 {strides = array<i32>} : memref<1x8x128xf32, #tpu.memory_space<vmem>>, vector<1x8x128xf32>,
    } else {
    }
    return
  }
  func.func @transform_0(%arg0: i32) -> (i32, i32) {
    %c0_i32 = arith.constant 0 : i32
    %c0_i32_0 = arith.constant 0 : i32
    return %arg0, %c0_i32 : i32, i32
  }
  func.func @transform_1(%arg0: i32) -> (i32, i32) {
    %c0_i32 = arith.constant 0 : i32
    %c0_i32_0 = arith.constant 0 : i32
    return %arg0, %c0_i32 : i32, i32
  }
  func.func @transform_2(%arg0: i32) -> (i32, i32, i32) {
    %c0_i32 = arith.constant 0 : i32
    %c0_i32_0 = arith.constant 0 : i32
    %c0_i32_1 = arith.constant 0 : i32
    %c0_i32_2 = arith.constant 0 : i32
    return %c0_i32, %c0_i32_0, %c0_i32_1 : i32, i32, i32
  }
}

</mosaic_0001>

<bundles_post_ra>
// kernel: _kl_reduce.1
= control target key start
LH: loop header
LB: loop body
LE: loop exit
PB: predicated region body
PF: predicated region fallthrough
CT: control target
= control target key end

     0   :  { %v50_v24 = vlaneseq  ;;  %s100_s0 = inlined_call_operand.vmem [shape: f32[16,128], index: 0, kind: input, shape index: {}]   ;;  %s101_s1 = inlined_call_operand.vmem [shape: f32[16,128], index: 1, kind: input, shape index: {}]   ;;  %s102_s2 = inlined_call_operand.vmem [shape: f32[1,8,128], index: 2, kind: output, shape index: {}]  }
   0x1   :  { %v16_v0 = vld [vmem:[%s100_s0] sm:$0xff]  ;;  %v17_v1 = vld [vmem:[%s100_s0 + $0x8] sm:$0xff] }
   0x2   :  { %v18_v2 = vld [vmem:[%s101_s1] sm:$0xff]  ;;  %v19_v3 = vld [vmem:[%s101_s1 + $0x8] sm:$0xff]  ;;  %v22_v6 = vmul.f32 %v16_v0, %v16_v0  ;;  %v23_v9 = vmul.f32 %v17_v1, %v17_v1  ;;  %v51_v25 = vshrl.u32 %v50_v24, 7  ;;  %v53_v26 = vand.u32 127, %v50_v24 }
   0x3   :  { %v26_v4 = vmul.f32 1.442695, %v18_v2  ;;  %v20_v5 = vadd.f32 1.0, %v18_v2  ;;  %v28_v7 = vmul.f32 1.442695, %v19_v3  ;;  %v21_v8 = vadd.f32 1.0, %v19_v3 }
   0x4   :  { %vm54_vm0 = vcmp.eq.s32.totalorder %v51_v25, 0  ;;  %vm55_vm1 = vcmp.eq.s32.totalorder %v53_v26, 0 }
   0x5   :  { %66 = vpow2.f32 %v26_v4  ;;  %v24_v10 = vsub.f32 %v20_v5, %v22_v6  ;;  %v25_v11 = vsub.f32 %v21_v8, %v23_v9  ;;  %vm56_vm2 = vmand %vm54_vm0, %vm55_vm1 }
   0x6   :  { %68 = vpow2.f32 %v28_v7 }
   0xb   :  { %v67_v12 = vpop.eup %66 }
   0xc   :  { %v69_v13 = vpop.eup %68  ;;  %v30_v14 = vsub.f32 %v24_v10, %v67_v12 }
   0xd   :  { %v31_v15 = vsub.f32 %v25_v11, %v69_v13 }
   0xf   :  { %v33_v16 = vadd.f32 %v31_v15, %v30_v14 }
  0x11   :  { %40 = vadd.xlane.f32.xlu0 %v33_v16 }
  0x84   :  { %v41_v17 = vpop.xlane.xlu0 %40 }
  0x85   :  { %v42_v18 = vrot.slane %v41_v17, 4 }
  0x87   :  { %v43_v19 = vadd.f32 %v42_v18, %v41_v17 }
  0x89   :  { %v44_v20 = vrot.slane %v43_v19, 2 }
  0x8b   :  { %v45_v21 = vadd.f32 %v44_v20, %v43_v19 }
  0x8d   :  { %v46_v22 = vrot.slane %v45_v21, 1 }
  0x8f   :  { %v47_v23 = vadd.f32 %v46_v22, %v45_v21 }
  0x91   :  { %64 = vpush %v47_v23 }
  0xc2   :  { %s65_s0 = spop %64 }
  0xc3   :  { %s49_s1 = smul.f32 -0.5, %s65_s0 }
  0xc5   :  { %v57_v27 = vstv %s49_s1 }
  0xc6   :  { %v58_v28 = vsel %vm56_vm2, %v57_v27, 0.0 }
  0xc7   :  { %59 = vst [vmem:[%s102_s2] sm:$0xff] %v58_v28 }

</bundles_post_ra>
